<compile_context>
chip_gen: v5e
topology: v5e:2x2
jax: 0.10.0
libtpu: 0.0.40
codegen_flags: <defaults>
</compile_context>

<pallas_src>
import functools

import jax
import jax.numpy as jnp
from jax.experimental import pallas as pl
from jax.experimental.pallas import tpu as pltpu


def decoder_attention_kernel(n_layers, hidden_size, input_size, len_enc, max_length,
                             batch_size, in_max,
                             # ---- input refs ----
                             inp_ref, hid_ref, enc_ref,
                             attn_ref, comb_ref, gru_wih_ref, gru_whh_ref, out_w_ref,
                             # ---- output refs ----
                             out_ref, hn_ref):
    H, I, B, L, ML = hidden_size, input_size, batch_size, len_enc, max_length

    ones = jnp.ones((B, 1), jnp.float32)          # hoisted; reused by every fused matmul

    x_in = inp_ref[...]                           # [B, I]
    h_last = hid_ref[n_layers - 1]                # [B, H]  (read before any hn write)

    # ---- attn linear, fused into ONE matmul: [x | h | 1] @ [W_attn ; b_attn] ----
    cat_xh1 = jnp.concatenate([x_in, h_last, ones], axis=1)           # [B, I+H+1]
    logits = jnp.dot(cat_xh1, attn_ref[...],
                     preferred_element_type=jnp.float32)              # [B, ML]

    # ---- softmax over the last dim (EUP approx reciprocal for the denominator) ----
    m = jnp.max(logits, axis=-1, keepdims=True)
    e = jnp.exp(logits - m)
    scores = e * pl.reciprocal(jnp.sum(e, axis=-1, keepdims=True), approx=True)

    # ---- truncate + renormalize (static branch); exact division for parity ----
    if ML > L:
        pos = jax.lax.broadcasted_iota(jnp.int32, (B, ML), 1)
        scores = jnp.where(pos < L, scores, 0.0)
        scores = scores / (jnp.sum(scores, axis=-1, keepdims=True) + 1e-5)

    # ---- attention context: pure-VPU weighted sum over encoder positions ----
    # enc_ref is the flipped encoder laid out [L, B, H]; each term is a [B,1]*[B,H]
    # broadcast FMA.  No MXU op, no O(B^2) operand.
    ctx = jnp.zeros((B, H), jnp.float32)
    for l in range(L):
        ctx = ctx + scores[:, l:l + 1] * enc_ref[l]                   # [B, H]

    # ---- attn_combine + ReLU, fused into ONE matmul: [x | ctx | 1] @ [W_comb ; b] ----
    cat_xc1 = jnp.concatenate([x_in, ctx, ones], axis=1)              # [B, I+H+1]
    x = jnp.maximum(
        jnp.dot(cat_xc1, comb_ref[...], preferred_element_type=jnp.float32), 0.0)  # [B, I]

    # ---- single-timestep multi-layer GRU: 2 fused matmuls per layer ----
    # gru_wih_ref: [n_layers, in_max+1, 3H]  (rows: layer input (zero-padded to in_max), then b_ih)
    # gru_whh_ref: [n_layers, H+1, 3H]       (rows: hidden, then b_hh)
    for k in range(n_layers):
        h_prev = hid_ref[k]                                           # [B, H]

        pad = in_max - x.shape[1]
        if pad > 0:
            # padded lanes hit zero weight rows, so their values are irrelevant
            x1 = jnp.concatenate([x, jnp.zeros((B, pad), jnp.float32), ones], axis=1)
        else:
            x1 = jnp.concatenate([x, ones], axis=1)                   # [B, in_max+1]
        h1 = jnp.concatenate([h_prev, ones], axis=1)                  # [B, H+1]

        gx = jnp.dot(x1, gru_wih_ref[k], preferred_element_type=jnp.float32)  # [B, 3H]
        gh = jnp.dot(h1, gru_whh_ref[k], preferred_element_type=jnp.float32)  # [B, 3H]

        r = jax.nn.sigmoid(gx[:, :H] + gh[:, :H])
        z = jax.nn.sigmoid(gx[:, H:2 * H] + gh[:, H:2 * H])
        n = jnp.tanh(gx[:, 2 * H:] + r * gh[:, 2 * H:])
        h_new = (1.0 - z) * n + z * h_prev

        hn_ref[k] = h_new                        # write after all reads of layer k
        x = h_new                                # feeds the next layer

    # ---- output projection, fused into ONE matmul: [h_top | 1] @ [W_out ; b_out] ----
    cat_o1 = jnp.concatenate([x, ones], axis=1)                       # [B, H+1]
    out_ref[...] = jnp.dot(cat_o1, out_w_ref[...],
                           preferred_element_type=jnp.float32)


def pack_params(params, input_size, hidden_size, n_layers):
    """One-time packing of the 17 parameter tensors into 5 VMEM-friendly buffers
    (bias rows folded into every weight)."""
    I, H = input_size, hidden_size
    in_max = max(I, H)

    attn_pack = jnp.concatenate([params["attn_w"], params["attn_b"][None, :]], axis=0)
    comb_pack = jnp.concatenate([params["comb_w"], params["comb_b"][None, :]], axis=0)
    out_pack = jnp.concatenate([params["out_w"], params["out_b"][None, :]], axis=0)

    wih, whh = [], []
    for k in range(n_layers):
        in_k = I if k == 0 else H
        w_ih = params[f"w_ih_{k}"]                                    # [in_k, 3H], gates r|z|n
        if in_k < in_max:
            w_ih = jnp.pad(w_ih, ((0, in_max - in_k), (0, 0)))        # zero rows -> no-op in dot
        w_ih = jnp.concatenate([w_ih, params[f"b_ih_{k}"][None, :]], axis=0)   # [in_max+1, 3H]
        w_hh = jnp.concatenate([params[f"w_hh_{k}"], params[f"b_hh_{k}"][None, :]],
                               axis=0)                                # [H+1, 3H]
        wih.append(w_ih)
        whh.append(w_hh)

    return {"attn": attn_pack, "comb": comb_pack, "out": out_pack,
            "gru_wih": jnp.stack(wih), "gru_whh": jnp.stack(whh)}


def decoder_attention(packed, inp, hidden, encoder_outputs):
    B, I = inp.shape
    n_layers, _, H = hidden.shape
    L = encoder_outputs.shape[1]
    ML = packed["attn"].shape[1]
    O = packed["out"].shape[1]
    in_max = max(I, H)
    assert ML >= L, "max_length must be >= encoder length (as in the torch module)"

    # glue: torch.flip + layout to [L, B, H] so the in-kernel context sum reads
    # contiguous [B, H] tiles per encoder position.
    enc_lbh = jnp.transpose(jnp.flip(encoder_outputs, axis=1), (1, 0, 2))

    kernel = functools.partial(decoder_attention_kernel,
                               n_layers, H, I, L, ML, B, in_max)

    out, h_n = pl.pallas_call(
        kernel,
        out_shape=(jax.ShapeDtypeStruct((B, O), jnp.float32),
                   jax.ShapeDtypeStruct((n_layers, B, H), jnp.float32)),
        in_specs=[pl.BlockSpec(memory_space=pltpu.MemorySpace.VMEM)] * 8,
        out_specs=(pl.BlockSpec(memory_space=pltpu.MemorySpace.VMEM),
                   pl.BlockSpec(memory_space=pltpu.MemorySpace.VMEM)),
        input_output_aliases={1: 1},   # hidden buffer reused for h_n (same shape/dtype)
    )(inp, hidden, enc_lbh, packed["attn"], packed["comb"],
      packed["gru_wih"], packed["gru_whh"], packed["out"])

    # torch returns output of shape [B, 1, output_size]
    return out[:, None, :], h_n


# ------------------- pure-JAX reference (for verification) -------------------
def decoder_attention_ref(params, inp, hidden, encoder_outputs):
    n_layers, B, H = hidden.shape
    L = encoder_outputs.shape[1]
    cat_ih = jnp.concatenate([inp, hidden[-1]], axis=-1)
    logits = cat_ih @ params["attn_w"] + params["attn_b"]
    scores = jax.nn.softmax(logits, axis=-1)
    if logits.shape[1] > L:
        scores = scores[:, :L]
        scores = scores / (scores.sum(axis=-1, keepdims=True) + 1e-5)
    enc_rev = jnp.flip(encoder_outputs, axis=1)
    self_att = jnp.einsum('bl,blh->bh', scores, enc_rev)
    cat_ia = jnp.concatenate([inp, self_att], axis=-1)
    x = jax.nn.relu(cat_ia @ params["comb_w"] + params["comb_b"])
    hs = []
    for k in range(n_layers):
        gx = x @ params[f"w_ih_{k}"] + params[f"b_ih_{k}"]
        gh = hidden[k] @ params[f"w_hh_{k}"] + params[f"b_hh_{k}"]
        r = jax.nn.sigmoid(gx[:, :H] + gh[:, :H])
        z = jax.nn.sigmoid(gx[:, H:2 * H] + gh[:, H:2 * H])
        n = jnp.tanh(gx[:, 2 * H:] + r * gh[:, 2 * H:])
        h_new = (1.0 - z) * n + z * hidden[k]
        hs.append(h_new)
        x = h_new
    out = x @ params["out_w"] + params["out_b"]
    return out[:, None, :], jnp.stack(hs)


def init_params(key, input_size, hidden_size, output_size, n_layers, max_length):
    """Deterministic synthetic parameters, stored as [in_features, out_features]."""
    params = {}

    def u(k, shape, scale=0.1):
        return jax.random.uniform(k, shape, jnp.float32, -scale, scale)

    keys = iter(jax.random.split(key, 8 + 4 * n_layers))
    params["attn_w"] = u(next(keys), (hidden_size + input_size, max_length))
    params["attn_b"] = u(next(keys), (max_length,))
    params["comb_w"] = u(next(keys), (hidden_size + input_size, input_size))
    params["comb_b"] = u(next(keys), (input_size,))
    for k in range(n_layers):
        in_k = input_size if k == 0 else hidden_size
        params[f"w_ih_{k}"] = u(next(keys), (in_k, 3 * hidden_size))
        params[f"w_hh_{k}"] = u(next(keys), (hidden_size, 3 * hidden_size))
        params[f"b_ih_{k}"] = u(next(keys), (3 * hidden_size,))
        params[f"b_hh_{k}"] = u(next(keys), (3 * hidden_size,))
    params["out_w"] = u(next(keys), (hidden_size, output_size))
    params["out_b"] = u(next(keys), (output_size,))
    return params


if __name__ == "__main__":
    B, I, H, O = 2, 32, 32, 32
    n_layers, max_length, L_enc = 2, 16, 8

    key = jax.random.PRNGKey(0)
    k_p, k_x, k_h, k_e = jax.random.split(key, 4)

    params = init_params(k_p, I, H, O, n_layers, max_length)
    inp = jax.random.normal(k_x, (B, I), jnp.float32)
    hidden = jax.random.normal(k_h, (n_layers, B, H), jnp.float32)
    enc_out = jax.random.normal(k_e, (B, L_enc, H), jnp.float32)

    # Compute the pure-JAX reference first (the kernel aliases `hidden` into h_n).
    out_ref, h_n_ref = jax.block_until_ready(
        decoder_attention_ref(params, inp, hidden, enc_out))

    packed = pack_params(params, I, H, n_layers)   # one-time packing of all weights
    out, h_n = jax.block_until_ready(decoder_attention(packed, inp, hidden, enc_out))

    assert out.shape == (B, 1, O) and h_n.shape == (n_layers, B, H)
    assert jnp.allclose(out, out_ref, atol=1e-2, rtol=1e-2)
    assert jnp.allclose(h_n, h_n_ref, atol=1e-2, rtol=1e-2)
    print("KERNEL_OK")
</pallas_src>

<mosaic_0001>
module attributes {stable_mosaic.version = 11 : i64} {
  func.func @decoder_attention_kernel(%arg0: memref<2x32xf32, #tpu.memory_space<vmem>>, %arg1: memref<2x2x32xf32, #tpu.memory_space<vmem>>, %arg2: memref<8x2x32xf32, #tpu.memory_space<vmem>>, %arg3: memref<65x16xf32, #tpu.memory_space<vmem>>, %arg4: memref<65x32xf32, #tpu.memory_space<vmem>>, %arg5: memref<2x33x96xf32, #tpu.memory_space<vmem>>, %arg6: memref<2x33x96xf32, #tpu.memory_space<vmem>>, %arg7: memref<33x32xf32, #tpu.memory_space<vmem>>, %arg8: memref<2x32xf32, #tpu.memory_space<vmem>>, %arg9: memref<2x2x32xf32, #tpu.memory_space<vmem>>) attributes {dimension_semantics = [], scalar_prefetch = 0 : i64, scratch_operands = 0 : i64, tpu.core_type = #tpu.core_type<tc>} {
    %cst = arith.constant 1.000000e+00 : f32
    %0 = vector.broadcast %cst : f32 to vector<2x1xf32>
    %c0 = arith.constant 0 : index
    %c0_0 = arith.constant 0 : index
    %1 = vector.load %arg0[%c0, %c0_0] : memref<2x32xf32, #tpu.memory_space<vmem>>, vector<2x32xf32>
    %c1 = arith.constant 1 : index
    %c0_1 = arith.constant 0 : index
    %c0_2 = arith.constant 0 : index
    %2 = vector.load %arg1[%c1, %c0_1, %c0_2] : memref<2x2x32xf32, #tpu.memory_space<vmem>>, vector<1x2x32xf32>
    %3 = vector.shape_cast %2 : vector<1x2x32xf32> to vector<2x32xf32>
    %4 = tpu.concatenate %1, %3, %0 in 1 : vector<2x32xf32>, vector<2x32xf32>, vector<2x1xf32> -> vector<2x65xf32>
    %c0_3 = arith.constant 0 : index
    %c0_4 = arith.constant 0 : index
    %5 = vector.load %arg3[%c0_3, %c0_4] : memref<65x16xf32, #tpu.memory_space<vmem>>, vector<65x16xf32>
    %cst_5 = arith.constant dense<0.000000e+00> : vector<2x16xf32>
    %6 = tpu.matmul %4, %5, %cst_5 {dimension_numbers = #tpu.dot_dimension_numbers<[1], [0], [0], [1], [0, 0, 1, 1], [], []>} : vector<2x65xf32>, vector<65x16xf32>, vector<2x16xf32> -> vector<2x16xf32>
    %cst_6 = arith.constant dense<0xFF800000> : vector<2xf32>
    %7 = vector.multi_reduction <maximumf>, %6, %cst_6 [1] : vector<2x16xf32> to vector<2xf32>
    %8 = vector.shape_cast %7 : vector<2xf32> to vector<2x1xf32>
    %9 = vector.broadcast %8 : vector<2x1xf32> to vector<2x16xf32>
    %10 = arith.subf %6, %9 : vector<2x16xf32>
    %11 = math.exp %10 : vector<2x16xf32>
    %cst_7 = arith.constant dense<0.000000e+00> : vector<2xf32>
    %12 = vector.multi_reduction <add>, %11, %cst_7 [1] : vector<2x16xf32> to vector<2xf32>
    %13 = vector.shape_cast %12 : vector<2xf32> to vector<2x1xf32>
    %14 = tpu.reciprocal %13 {approx = true} : vector<2x1xf32> -> vector<2x1xf32>
    %15 = vector.broadcast %14 : vector<2x1xf32> to vector<2x16xf32>
    %16 = arith.mulf %11, %15 : vector<2x16xf32>
    %17 = tpu.iota {dimensions = array<i32: 1>} : vector<2x16xi32>
    %c8_i32 = arith.constant 8 : i32
    %18 = vector.broadcast %c8_i32 : i32 to vector<2x16xi32>
    %19 = arith.cmpi slt, %17, %18 : vector<2x16xi32>
    %cst_8 = arith.constant 0.000000e+00 : f32
    %20 = vector.broadcast %cst_8 : f32 to vector<2x16xf32>
    %21 = arith.select %19, %16, %20 : vector<2x16xi1>, vector<2x16xf32>
    %cst_9 = arith.constant dense<0.000000e+00> : vector<2xf32>
    %22 = vector.multi_reduction <add>, %21, %cst_9 [1] : vector<2x16xf32> to vector<2xf32>
    %23 = vector.shape_cast %22 : vector<2xf32> to vector<2x1xf32>
    %cst_10 = arith.constant 9.99999974E-6 : f32
    %24 = vector.broadcast %cst_10 : f32 to vector<2x1xf32>
    %25 = arith.addf %23, %24 : vector<2x1xf32>
    %26 = vector.broadcast %25 : vector<2x1xf32> to vector<2x16xf32>
    %27 = arith.divf %21, %26 : vector<2x16xf32>
    %cst_11 = arith.constant 0.000000e+00 : f32
    %28 = vector.broadcast %cst_11 : f32 to vector<2x32xf32>
    %29 = vector.extract_strided_slice %27 {offsets = [0, 0], sizes = [2, 1], strides = [1, 1]} : vector<2x16xf32> to vector<2x1xf32>
    %c0_12 = arith.constant 0 : index
    %c0_13 = arith.constant 0 : index
    %c0_14 = arith.constant 0 : index
    %30 = vector.load %arg2[%c0_12, %c0_13, %c0_14] : memref<8x2x32xf32, #tpu.memory_space<vmem>>, vector<1x2x32xf32>
    %31 = vector.shape_cast %30 : vector<1x2x32xf32> to vector<2x32xf32>
    %32 = vector.broadcast %29 : vector<2x1xf32> to vector<2x32xf32>
    %33 = arith.mulf %32, %31 : vector<2x32xf32>
    %34 = arith.addf %28, %33 : vector<2x32xf32>
    %35 = vector.extract_strided_slice %27 {offsets = [0, 1], sizes = [2, 1], strides = [1, 1]} : vector<2x16xf32> to vector<2x1xf32>
    %c1_15 = arith.constant 1 : index
    %c0_16 = arith.constant 0 : index
    %c0_17 = arith.constant 0 : index
    %36 = vector.load %arg2[%c1_15, %c0_16, %c0_17] : memref<8x2x32xf32, #tpu.memory_space<vmem>>, vector<1x2x32xf32>
    %37 = vector.shape_cast %36 : vector<1x2x32xf32> to vector<2x32xf32>
    %38 = vector.broadcast %35 : vector<2x1xf32> to vector<2x32xf32>
    %39 = arith.mulf %38, %37 : vector<2x32xf32>
    %40 = arith.addf %34, %39 : vector<2x32xf32>
    %41 = vector.extract_strided_slice %27 {offsets = [0, 2], sizes = [2, 1], strides = [1, 1]} : vector<2x16xf32> to vector<2x1xf32>
    %c2 = arith.constant 2 : index
    %c0_18 = arith.constant 0 : index
    %c0_19 = arith.constant 0 : index
    %42 = vector.load %arg2[%c2, %c0_18, %c0_19] : memref<8x2x32xf32, #tpu.memory_space<vmem>>, vector<1x2x32xf32>
    %43 = vector.shape_cast %42 : vector<1x2x32xf32> to vector<2x32xf32>
    %44 = vector.broadcast %41 : vector<2x1xf32> to vector<2x32xf32>
    %45 = arith.mulf %44, %43 : vector<2x32xf32>
    %46 = arith.addf %40, %45 : vector<2x32xf32>
    %47 = vector.extract_strided_slice %27 {offsets = [0, 3], sizes = [2, 1], strides = [1, 1]} : vector<2x16xf32> to vector<2x1xf32>
    %c3 = arith.constant 3 : index
    %c0_20 = arith.constant 0 : index
    %c0_21 = arith.constant 0 : index
    %48 = vector.load %arg2[%c3, %c0_20, %c0_21] : memref<8x2x32xf32, #tpu.memory_space<vmem>>, vector<1x2x32xf32>
    %49 = vector.shape_cast %48 : vector<1x2x32xf32> to vector<2x32xf32>
    %50 = vector.broadcast %47 : vector<2x1xf32> to vector<2x32xf32>
    %51 = arith.mulf %50, %49 : vector<2x32xf32>
    %52 = arith.addf %46, %51 : vector<2x32xf32>
    %53 = vector.extract_strided_slice %27 {offsets = [0, 4], sizes = [2, 1], strides = [1, 1]} : vector<2x16xf32> to vector<2x1xf32>
    %c4 = arith.constant 4 : index
    %c0_22 = arith.constant 0 : index
    %c0_23 = arith.constant 0 : index
    %54 = vector.load %arg2[%c4, %c0_22, %c0_23] : memref<8x2x32xf32, #tpu.memory_space<vmem>>, vector<1x2x32xf32>
    %55 = vector.shape_cast %54 : vector<1x2x32xf32> to vector<2x32xf32>
    %56 = vector.broadcast %53 : vector<2x1xf32> to vector<2x32xf32>
    %57 = arith.mulf %56, %55 : vector<2x32xf32>
    %58 = arith.addf %52, %57 : vector<2x32xf32>
    %59 = vector.extract_strided_slice %27 {offsets = [0, 5], sizes = [2, 1], strides = [1, 1]} : vector<2x16xf32> to vector<2x1xf32>
    %c5 = arith.constant 5 : index
    %c0_24 = arith.constant 0 : index
    %c0_25 = arith.constant 0 : index
    %60 = vector.load %arg2[%c5, %c0_24, %c0_25] : memref<8x2x32xf32, #tpu.memory_space<vmem>>, vector<1x2x32xf32>
    %61 = vector.shape_cast %60 : vector<1x2x32xf32> to vector<2x32xf32>
    %62 = vector.broadcast %59 : vector<2x1xf32> to vector<2x32xf32>
    %63 = arith.mulf %62, %61 : vector<2x32xf32>
    %64 = arith.addf %58, %63 : vector<2x32xf32>
    %65 = vector.extract_strided_slice %27 {offsets = [0, 6], sizes = [2, 1], strides = [1, 1]} : vector<2x16xf32> to vector<2x1xf32>
    %c6 = arith.constant 6 : index
    %c0_26 = arith.constant 0 : index
    %c0_27 = arith.constant 0 : index
    %66 = vector.load %arg2[%c6, %c0_26, %c0_27] : memref<8x2x32xf32, #tpu.memory_space<vmem>>, vector<1x2x32xf32>
    %67 = vector.shape_cast %66 : vector<1x2x32xf32> to vector<2x32xf32>
    %68 = vector.broadcast %65 : vector<2x1xf32> to vector<2x32xf32>
    %69 = arith.mulf %68, %67 : vector<2x32xf32>
    %70 = arith.addf %64, %69 : vector<2x32xf32>
    %71 = vector.extract_strided_slice %27 {offsets = [0, 7], sizes = [2, 1], strides = [1, 1]} : vector<2x16xf32> to vector<2x1xf32>
    %c7 = arith.constant 7 : index
    %c0_28 = arith.constant 0 : index
    %c0_29 = arith.constant 0 : index
    %72 = vector.load %arg2[%c7, %c0_28, %c0_29] : memref<8x2x32xf32, #tpu.memory_space<vmem>>, vector<1x2x32xf32>
    %73 = vector.shape_cast %72 : vector<1x2x32xf32> to vector<2x32xf32>
    %74 = vector.broadcast %71 : vector<2x1xf32> to vector<2x32xf32>
    %75 = arith.mulf %74, %73 : vector<2x32xf32>
    %76 = arith.addf %70, %75 : vector<2x32xf32>
    %77 = tpu.concatenate %1, %76, %0 in 1 : vector<2x32xf32>, vector<2x32xf32>, vector<2x1xf32> -> vector<2x65xf32>
    %c0_30 = arith.constant 0 : index
    %c0_31 = arith.constant 0 : index
    %78 = vector.load %arg4[%c0_30, %c0_31] : memref<65x32xf32, #tpu.memory_space<vmem>>, vector<65x32xf32>
    %cst_32 = arith.constant dense<0.000000e+00> : vector<2x32xf32>
    %79 = tpu.matmul %77, %78, %cst_32 {dimension_numbers = #tpu.dot_dimension_numbers<[1], [0], [0], [1], [0, 0, 1, 1], [], []>} : vector<2x65xf32>, vector<65x32xf32>, vector<2x32xf32> -> vector<2x32xf32>
    %cst_33 = arith.constant 0.000000e+00 : f32
    %80 = vector.broadcast %cst_33 : f32 to vector<2x32xf32>
    %81 = arith.maximumf %79, %80 : vector<2x32xf32>
    %c0_34 = arith.constant 0 : index
    %c0_35 = arith.constant 0 : index
    %c0_36 = arith.constant 0 : index
    %82 = vector.load %arg1[%c0_34, %c0_35, %c0_36] : memref<2x2x32xf32, #tpu.memory_space<vmem>>, vector<1x2x32xf32>
    %83 = vector.shape_cast %82 : vector<1x2x32xf32> to vector<2x32xf32>
    %84 = tpu.concatenate %81, %0 in 1 : vector<2x32xf32>, vector<2x1xf32> -> vector<2x33xf32>
    %85 = tpu.concatenate %83, %0 in 1 : vector<2x32xf32>, vector<2x1xf32> -> vector<2x33xf32>
    %c0_37 = arith.constant 0 : index
    %c0_38 = arith.constant 0 : index
    %c0_39 = arith.constant 0 : index
    %86 = vector.load %arg5[%c0_37, %c0_38, %c0_39] : memref<2x33x96xf32, #tpu.memory_space<vmem>>, vector<1x33x96xf32>
    %87 = vector.shape_cast %86 : vector<1x33x96xf32> to vector<33x96xf32>
    %cst_40 = arith.constant dense<0.000000e+00> : vector<2x96xf32>
    %88 = tpu.matmul %84, %87, %cst_40 {dimension_numbers = #tpu.dot_dimension_numbers<[1], [0], [0], [1], [0, 0, 1, 1], [], []>} : vector<2x33xf32>, vector<33x96xf32>, vector<2x96xf32> -> vector<2x96xf32>
    %c0_41 = arith.constant 0 : index
    %c0_42 = arith.constant 0 : index
    %c0_43 = arith.constant 0 : index
    %89 = vector.load %arg6[%c0_41, %c0_42, %c0_43] : memref<2x33x96xf32, #tpu.memory_space<vmem>>, vector<1x33x96xf32>
    %90 = vector.shape_cast %89 : vector<1x33x96xf32> to vector<33x96xf32>
    %cst_44 = arith.constant dense<0.000000e+00> : vector<2x96xf32>
    %91 = tpu.matmul %85, %90, %cst_44 {dimension_numbers = #tpu.dot_dimension_numbers<[1], [0], [0], [1], [0, 0, 1, 1], [], []>} : vector<2x33xf32>, vector<33x96xf32>, vector<2x96xf32> -> vector<2x96xf32>
    %92 = vector.extract_strided_slice %88 {offsets = [0, 0], sizes = [2, 32], strides = [1, 1]} : vector<2x96xf32> to vector<2x32xf32>
    %93 = vector.extract_strided_slice %91 {offsets = [0, 0], sizes = [2, 32], strides = [1, 1]} : vector<2x96xf32> to vector<2x32xf32>
    %94 = arith.addf %92, %93 : vector<2x32xf32>
    %95 = arith.negf %94 : vector<2x32xf32>
    %96 = math.exp %95 : vector<2x32xf32>
    %cst_45 = arith.constant 1.000000e+00 : f32
    %97 = vector.broadcast %cst_45 : f32 to vector<2x32xf32>
    %98 = arith.addf %97, %96 : vector<2x32xf32>
    %99 = arith.divf %97, %98 : vector<2x32xf32>
    %100 = vector.extract_strided_slice %88 {offsets = [0, 32], sizes = [2, 32], strides = [1, 1]} : vector<2x96xf32> to vector<2x32xf32>
    %101 = vector.extract_strided_slice %91 {offsets = [0, 32], sizes = [2, 32], strides = [1, 1]} : vector<2x96xf32> to vector<2x32xf32>
    %102 = arith.addf %100, %101 : vector<2x32xf32>
    %103 = arith.negf %102 : vector<2x32xf32>
    %104 = math.exp %103 : vector<2x32xf32>
    %cst_46 = arith.constant 1.000000e+00 : f32
    %105 = vector.broadcast %cst_46 : f32 to vector<2x32xf32>
    %106 = arith.addf %105, %104 : vector<2x32xf32>
    %107 = arith.divf %105, %106 : vector<2x32xf32>
    %108 = vector.extract_strided_slice %88 {offsets = [0, 64], sizes = [2, 32], strides = [1, 1]} : vector<2x96xf32> to vector<2x32xf32>
    %109 = vector.extract_strided_slice %91 {offsets = [0, 64], sizes = [2, 32], strides = [1, 1]} : vector<2x96xf32> to vector<2x32xf32>
    %110 = arith.mulf %99, %109 : vector<2x32xf32>
    %111 = arith.addf %108, %110 : vector<2x32xf32>
    %112 = math.tanh %111 : vector<2x32xf32>
    %cst_47 = arith.constant 1.000000e+00 : f32
    %113 = vector.broadcast %cst_47 : f32 to vector<2x32xf32>
    %114 = arith.subf %113, %107 : vector<2x32xf32>
    %115 = arith.mulf %114, %112 : vector<2x32xf32>
    %116 = arith.mulf %107, %83 : vector<2x32xf32>
    %117 = arith.addf %115, %116 : vector<2x32xf32>
    %c0_48 = arith.constant 0 : index
    %c0_49 = arith.constant 0 : index
    %c0_50 = arith.constant 0 : index
    %118 = vector.load %arg9[%c0_48, %c0_49, %c0_50] : memref<2x2x32xf32, #tpu.memory_space<vmem>>, vector<1x2x32xf32>
    %119 = vector.shape_cast %118 : vector<1x2x32xf32> to vector<2x32xf32>
    %120 = vector.shape_cast %117 : vector<2x32xf32> to vector<1x2x32xf32>
    tpu.vector_store %arg9[%c0_48, %c0_49, %c0_50], %120 {strides = array<i32>} : memref<2x2x32xf32, #tpu.memory_space<vmem>>, vector<1x2x32xf32>,
    %c1_51 = arith.constant 1 : index
    %c0_52 = arith.constant 0 : index
    %c0_53 = arith.constant 0 : index
    %121 = vector.load %arg1[%c1_51, %c0_52, %c0_53] : memref<2x2x32xf32, #tpu.memory_space<vmem>>, vector<1x2x32xf32>
    %122 = vector.shape_cast %121 : vector<1x2x32xf32> to vector<2x32xf32>
    %123 = tpu.concatenate %117, %0 in 1 : vector<2x32xf32>, vector<2x1xf32> -> vector<2x33xf32>
    %124 = tpu.concatenate %122, %0 in 1 : vector<2x32xf32>, vector<2x1xf32> -> vector<2x33xf32>
    %c1_54 = arith.constant 1 : index
    %c0_55 = arith.constant 0 : index
    %c0_56 = arith.constant 0 : index
    %125 = vector.load %arg5[%c1_54, %c0_55, %c0_56] : memref<2x33x96xf32, #tpu.memory_space<vmem>>, vector<1x33x96xf32>
    %126 = vector.shape_cast %125 : vector<1x33x96xf32> to vector<33x96xf32>
    %cst_57 = arith.constant dense<0.000000e+00> : vector<2x96xf32>
    %127 = tpu.matmul %123, %126, %cst_57 {dimension_numbers = #tpu.dot_dimension_numbers<[1], [0], [0], [1], [0, 0, 1, 1], [], []>} : vector<2x33xf32>, vector<33x96xf32>, vector<2x96xf32> -> vector<2x96xf32>
    %c1_58 = arith.constant 1 : index
    %c0_59 = arith.constant 0 : index
    %c0_60 = arith.constant 0 : index
    %128 = vector.load %arg6[%c1_58, %c0_59, %c0_60] : memref<2x33x96xf32, #tpu.memory_space<vmem>>, vector<1x33x96xf32>
    %129 = vector.shape_cast %128 : vector<1x33x96xf32> to vector<33x96xf32>
    %cst_61 = arith.constant dense<0.000000e+00> : vector<2x96xf32>
    %130 = tpu.matmul %124, %129, %cst_61 {dimension_numbers = #tpu.dot_dimension_numbers<[1], [0], [0], [1], [0, 0, 1, 1], [], []>} : vector<2x33xf32>, vector<33x96xf32>, vector<2x96xf32> -> vector<2x96xf32>
    %131 = vector.extract_strided_slice %127 {offsets = [0, 0], sizes = [2, 32], strides = [1, 1]} : vector<2x96xf32> to vector<2x32xf32>
    %132 = vector.extract_strided_slice %130 {offsets = [0, 0], sizes = [2, 32], strides = [1, 1]} : vector<2x96xf32> to vector<2x32xf32>
    %133 = arith.addf %131, %132 : vector<2x32xf32>
    %134 = arith.negf %133 : vector<2x32xf32>
    %135 = math.exp %134 : vector<2x32xf32>
    %cst_62 = arith.constant 1.000000e+00 : f32
    %136 = vector.broadcast %cst_62 : f32 to vector<2x32xf32>
    %137 = arith.addf %136, %135 : vector<2x32xf32>
    %138 = arith.divf %136, %137 : vector<2x32xf32>
    %139 = vector.extract_strided_slice %127 {offsets = [0, 32], sizes = [2, 32], strides = [1, 1]} : vector<2x96xf32> to vector<2x32xf32>
    %140 = vector.extract_strided_slice %130 {offsets = [0, 32], sizes = [2, 32], strides = [1, 1]} : vector<2x96xf32> to vector<2x32xf32>
    %141 = arith.addf %139, %140 : vector<2x32xf32>
    %142 = arith.negf %141 : vector<2x32xf32>
    %143 = math.exp %142 : vector<2x32xf32>
    %cst_63 = arith.constant 1.000000e+00 : f32
    %144 = vector.broadcast %cst_63 : f32 to vector<2x32xf32>
    %145 = arith.addf %144, %143 : vector<2x32xf32>
    %146 = arith.divf %144, %145 : vector<2x32xf32>
    %147 = vector.extract_strided_slice %127 {offsets = [0, 64], sizes = [2, 32], strides = [1, 1]} : vector<2x96xf32> to vector<2x32xf32>
    %148 = vector.extract_strided_slice %130 {offsets = [0, 64], sizes = [2, 32], strides = [1, 1]} : vector<2x96xf32> to vector<2x32xf32>
    %149 = arith.mulf %138, %148 : vector<2x32xf32>
    %150 = arith.addf %147, %149 : vector<2x32xf32>
    %151 = math.tanh %150 : vector<2x32xf32>
    %cst_64 = arith.constant 1.000000e+00 : f32
    %152 = vector.broadcast %cst_64 : f32 to vector<2x32xf32>
    %153 = arith.subf %152, %146 : vector<2x32xf32>
    %154 = arith.mulf %153, %151 : vector<2x32xf32>
    %155 = arith.mulf %146, %122 : vector<2x32xf32>
    %156 = arith.addf %154, %155 : vector<2x32xf32>
    %c1_65 = arith.constant 1 : index
    %c0_66 = arith.constant 0 : index
    %c0_67 = arith.constant 0 : index
    %157 = vector.load %arg9[%c1_65, %c0_66, %c0_67] : memref<2x2x32xf32, #tpu.memory_space<vmem>>, vector<1x2x32xf32>
    %158 = vector.shape_cast %157 : vector<1x2x32xf32> to vector<2x32xf32>
    %159 = vector.shape_cast %156 : vector<2x32xf32> to vector<1x2x32xf32>
    tpu.vector_store %arg9[%c1_65, %c0_66, %c0_67], %159 {strides = array<i32>} : memref<2x2x32xf32, #tpu.memory_space<vmem>>, vector<1x2x32xf32>,
    %160 = tpu.concatenate %156, %0 in 1 : vector<2x32xf32>, vector<2x1xf32> -> vector<2x33xf32>
    %c0_68 = arith.constant 0 : index
    %c0_69 = arith.constant 0 : index
    %161 = vector.load %arg7[%c0_68, %c0_69] : memref<33x32xf32, #tpu.memory_space<vmem>>, vector<33x32xf32>
    %cst_70 = arith.constant dense<0.000000e+00> : vector<2x32xf32>
    %162 = tpu.matmul %160, %161, %cst_70 {dimension_numbers = #tpu.dot_dimension_numbers<[1], [0], [0], [1], [0, 0, 1, 1], [], []>} : vector<2x33xf32>, vector<33x32xf32>, vector<2x32xf32> -> vector<2x32xf32>
    %c0_71 = arith.constant 0 : index
    %c0_72 = arith.constant 0 : index
    %163 = vector.load %arg8[%c0_71, %c0_72] : memref<2x32xf32, #tpu.memory_space<vmem>>, vector<2x32xf32>
    tpu.vector_store %arg8[%c0_71, %c0_72], %162 {strides = array<i32>} : memref<2x32xf32, #tpu.memory_space<vmem>>, vector<2x32xf32>,
    return
  }
}

</mosaic_0001>

<bundles_post_ra>
// kernel: tpu_custom_call.1
= control target key start
LH: loop header
LB: loop body
LE: loop exit
PB: predicated region body
PF: predicated region fallthrough
CT: control target
= control target key end

     0   :  { %15 = vsyncpa [#allocation3], 0  ;;  %s971_s0 = inlined_call_operand.vmem [shape: f32[2,32], index: 0, kind: input, shape index: {}]   ;;  %s972_s1 = inlined_call_operand.hbm [shape: f32[2,2,32], index: 1, kind: input, shape index: {}, may-alias: {1,9}]   ;;  %s973_s2 = inlined_call_operand.vmem [shape: f32[8,2,32], index: 2, kind: input, shape index: {}]   ;;  %s974_s3 = inlined_call_operand.vmem [shape: f32[65,16], index: 3, kind: input, shape index: {}]   ;;  %s975_s4 = inlined_call_operand.vmem [shape: f32[65,32], index: 4, kind: input, shape index: {}]   ;;  %s976_s5 = inlined_call_operand.vmem [shape: f32[2,33,96], index: 5, kind: input, shape index: {}]   ;;  %s977_s6 = inlined_call_operand.vmem [shape: f32[2,33,96], index: 6, kind: input, shape index: {}]   ;;  %s978_s7 = inlined_call_operand.vmem [shape: f32[33,32], index: 7, kind: input, shape index: {}]   ;;  %s979_s8 = inlined_call_operand.hbm [shape: f32[2,32], index: 8, kind: output, shape index: {0}]   ;;  %s980_s9 = inlined_call_operand.hbm [shape: f32[2,2,32], index: 9, kind: output, shape index: {1}, may-alias: {1,9}]  }
   0x1   :  { %16 = vsyncpa [#allocation4], 0 }
   0x2   :  { %17 = vsyncpa [#allocation7], 0  ;;  %s24_s11 = sshll.u32 %s972_s1, 4  ;;  %s690_s12 = smov [#allocation2]   ;;  %s25_s11 = int_to_ptr.hbm [resolvable:$true] %s24_s11 }
   0x3   :  { %s26_s13 = sshll.u32 %s690_s12, 4  ;;  %s691_s14 = smov 32   ;;  %s27_s13 = int_to_ptr.vmem [resolvable:$true] %s26_s13 }
   0x4   :  { %s692_s15 = smov 2  }
   0x5   :  { %32 = dma.hbm_to_vmem [thread:$0]  %s25_s11, 64, %s27_s13, [#allocation3], %s691_s14, %s691_s14, %s692_s15  }
   0x6   :  { %684 = dma.done.wait [#allocation3], 64  }
   0x7   :  { %685 = vsyncadd [#allocation3], 4294967232  ;;  %vm73_vm0 = vcmask 1040384   ;;  %v51_v0 = vld [vmem:[#allocation2 + $0x2] sm:$0x3]  ;;  %v67_v2 = vld [vmem:[%s974_s3 + $0x38] sm:$0xff]  ;;  %v109_v21 = vlaneseq }
   0x8   :  { %v68_v1 = vld [vmem:[%s974_s3 + $0x40] sm:$0x1]  ;;  %53 = vrot.lane.b32.xlu0 %v51_v0, %s691_s14  ;;  %v66_v3 = vld [vmem:[%s974_s3 + $0x30] sm:$0xff]  ;;  %v65_v4 = vld [vmem:[%s974_s3 + $0x28] sm:$0xff]  ;;  %vm56_vm1 = vcmask 261120   ;;  %vm58_vm2 = vcmask 523264  }
   0x9   :  { %537 = vmatpush.msk.msra.mxu0 %vm73_vm0, %v68_v1  ;;  %v64_v5 = vld [vmem:[%s974_s3 + $0x20] sm:$0xff]  ;;  %v63_v6 = vld [vmem:[%s974_s3 + $0x18] sm:$0xff]  ;;  %v62_v7 = vld [vmem:[%s974_s3 + $0x10] sm:$0xff]  ;;  %vm69_vm3 = vcmask 531456   ;;  %vm97_vm4 = vcmask 123904   ;;  %v110_v23 = vand.u32 127, %v109_v21 }
   0xa   :  { %v61_v8 = vld [vmem:[%s974_s3 + $0x8] sm:$0xff]  ;;  %v60_v9 = vld [vmem:[%s974_s3] sm:$0xff]  ;;  %v693_v28 = vmov 2   ;;  %v694_v29 = vmov 0   ;;  %v695_v30 = vmov 7   ;;  %v696_v44 = vmov 1  }
   0xb   :  { %85 = vmatpush.msra.mxu0 %v67_v2  ;;  %v793_v10 = vld [vmem:[%s971_s0] sm:$0x3]  ;;  %vm111_vm5 = vcmp.lt.s32.totalorder %v110_v23, 8  ;;  %587 = vset.pattern.permute.xlu1 %v693_v28  ;;  %v697_v45 = vmov 3   ;;  %v698_v46 = vmov 4   ;;  %v699_v47 = vmov 5  }
   0xc   :  { %585 = vset.pattern.permute.xlu2 %v694_v29  ;;  %593 = vset.pattern.permute.xlu0 %v695_v30  ;;  %v700_v48 = vmov 6   ;;  %v210_v52 = vld [vmem:[%s975_s4 + $0x40] sm:$0x1]  ;;  %v209_v53 = vld [vmem:[%s975_s4 + $0x38] sm:$0xff]  ;;  %v208_v54 = vld [vmem:[%s975_s4 + $0x30] sm:$0xff]  ;;  %vm246_vm10 = vcmask 269312  }
   0xd   :  { %86 = vmatpush.msra.mxu0 %v66_v3  ;;  %546 = vmatpush.msk.msra.mxu1 %vm73_vm0, %v210_v52  ;;  %v207_v55 = vld [vmem:[%s975_s4 + $0x28] sm:$0xff]  ;;  %v206_v56 = vld [vmem:[%s975_s4 + $0x20] sm:$0xff]  ;;  %v205_v59 = vld [vmem:[%s975_s4 + $0x18] sm:$0xff]  ;;  %s701_s21 = smov 64   ;;  %vm351_vm15 = vcmask 254976   ;;  %s703_s27 = smov [#allocation6]  }
   0xe   :  { %v539_v57 = vld [vmem:[%s973_s2 + $0x2] sm:$0x3]  ;;  %v132_v60 = vld [vmem:[%s973_s2] sm:$0x3]  ;;  %v540_v61 = vld [vmem:[%s973_s2 + $0x4] sm:$0x3] }
   0xf   :  { %87 = vmatpush.msra.mxu0 %v65_v4  ;;  %225 = vmatpush.msra.mxu1 %v209_v53  ;;  %v204_v0 = vld [vmem:[%s975_s4 + $0x10] sm:$0xff]  ;;  %v203_v3 = vld [vmem:[%s975_s4 + $0x8] sm:$0xff]  ;;  %v245_v29 = vld [vmem:[%s976_s5 + $0x20] sm:$0x1]  ;;  %s517_s28 = sshll.u32 %s703_s27, 4  ;;  %s519_s10 = sshll.u32 %s980_s9, 4  ;;  %s518_s28 = int_to_ptr.vmem [resolvable:$true] %s517_s28  ;;  %s520_s10 = int_to_ptr.hbm [resolvable:$true] %s519_s10 }
  0x10   :  { %v275_v28 = vld [vmem:[%s977_s6 + $0x10] sm:$0xff]  ;;  %548 = vmatpush.msk.msra.mxu2 %vm73_vm0, %v245_v29  ;;  %s509_s12 = sshll.u32 %s979_s8, 4  ;;  %s510_s12 = int_to_ptr.hbm [resolvable:$true] %s509_s12 }
  0x11   :  { %88 = vmatpush.msra.mxu0 %v64_v5  ;;  %226 = vmatpush.msra.mxu1 %v208_v54  ;;  %v541_v5 = vld [vmem:[%s973_s2 + $0x6] sm:$0x3] }
  0x13   :  { %89 = vmatpush.msra.mxu0 %v63_v6  ;;  %227 = vmatpush.msra.mxu1 %v207_v55 }
  0x15   :  { %90 = vmatpush.msra.mxu0 %v62_v7  ;;  %228 = vmatpush.msra.mxu1 %v206_v56 }
  0x17   :  { %91 = vmatpush.msra.mxu0 %v61_v8  ;;  %229 = vmatpush.msra.mxu1 %v205_v59  ;;  %v542_v8 = vld [vmem:[%s973_s2 + $0x8] sm:$0x3] }
  0x19   :  { %92 = vmatpush.msra.mxu0 %v60_v9  ;;  %230 = vmatpush.msra.mxu1 %v204_v0 }
  0x1b   :  { %231 = vmatpush.msra.mxu1 %v203_v3  ;;  %v561_v3 = vld [vmem:[%s977_s6 + $0x30] sm:$0xff] }
  0x7a   :  { %v54_v11 = vpop.permute.xlu0 %53 }
  0x7b   :  { %v57_v12 = vsel %vm56_vm1, %v793_v10, %v54_v11  ;;  %v543_v11 = vld [vmem:[%s973_s2 + $0xa] sm:$0x3] }
  0x7c   :  { %v59_v13 = vsel %vm58_vm2, %v57_v12, 1.0 }
  0x7d   :  { %538 = vmatmul.msk.f32.vlgmr.msra.gmra.mxu0 %vm69_vm3, %v59_v13 }
  0xfa   :  { %v94_v14 = vpop.f32.mrf.mxu0 }
  0xfb   :  { %v98_v15 = vsel %vm97_vm4, %v94_v14, -inf }
  0xfc   :  { %99 = vmax.xlane.f32.xlu0 %v98_v15  ;;  %v544_v15 = vld [vmem:[%s973_s2 + $0xc] sm:$0x3] }
 0x16f   :  { %v100_v16 = vpop.xlane.xlu0 %99 }
 0x170   :  { %v101_v17 = vsub.f32 %v94_v14, %v100_v16 }
 0x172   :  { %v102_v18 = vmul.f32 1.442695, %v101_v17  ;;  %v545_v17 = vld [vmem:[%s973_s2 + $0xe] sm:$0x3]  ;;  %s702_s2 = smov 96  }
 0x174   :  { %594 = vpow2.f32 %v102_v18 }
 0x17a   :  { %v595_v19 = vpop.eup %594 }
 0x17b   :  { %v104_v20 = vsel %vm97_vm4, %v595_v19, 0.0 }
 0x17c   :  { %105 = vadd.xlane.f32.xlu1 %v104_v20 }
 0x1ef   :  { %v106_v22 = vpop.xlane.xlu1 %105 }
 0x1f0   :  { %596 = vrcp.f32 %v106_v22 }
 0x1f6   :  { %v597_v24 = vpop.eup %596 }
 0x1f7   :  { %v108_v25 = vmul.f32 %v597_v24, %v595_v19 }
 0x1f9   :  { %v112_v26 = vsel %vm111_vm5, %v108_v25, 0.0  ;;  %v202_v25 = vld [vmem:[%s975_s4] sm:$0xff] }
 0x1fa   :  { %v113_v27 = vsel %vm97_vm4, %v112_v26, 0.0  ;;  %232 = vmatpush.msra.mxu1 %v202_v25 }
 0x1fb   :  { %114 = vadd.xlane.f32.xlu1 %v113_v27  ;;  %v276_v27 = vld [vmem:[%s977_s6 + $0x18] sm:$0xff] }
 0x26e   :  { %v115_v31 = vpop.xlane.xlu1 %114 }
 0x26f   :  { %v116_v32 = vadd.f32 1e-05, %v115_v31  ;;  %v274_v31 = vld [vmem:[%s977_s6 + $0x8] sm:$0xff] }
 0x271   :  { %598 = vrcp.f32 %v116_v32  ;;  %v128_v36 = vand.u32 2147483648, %v116_v32  ;;  %v126_v38 = vand.u32 2147483647, %v116_v32  ;;  %vm122_vm7 = vweird.f32 %v116_v32 }
 0x273   :  { %v129_v40 = vor.u32 1.1754944e-38, %v128_v36  ;;  %vm127_vm9 = vcmp.eq.f32.partialorder %v126_v38, 8.507059e+37 }
 0x277   :  { %v599_v33 = vpop.eup %598 }
 0x278   :  { %v118_v34 = vmul.f32 %v599_v33, %v116_v32  ;;  %vm123_vm6 = vweird.f32 %v599_v33  ;;  %v238_v32 = vld [vmem:[#allocation2] sm:$0x3] }
 0x279   :  { %vm124_vm8 = vmor %vm122_vm7, %vm123_vm6 }
 0x27a   :  { %v119_v35 = vsub.f32 1.0, %v118_v34  ;;  %v273_v34 = vld [vmem:[%s977_s6] sm:$0xff] }
 0x27c   :  { %v120_v37 = vmul.f32 %v599_v33, %v119_v35  ;;  %v240_v35 = vsel %vm56_vm1, %v238_v32, 1.0 }
 0x27e   :  { %v121_v39 = vadd.f32 %v599_v33, %v120_v37 }
 0x280   :  { %v125_v41 = vsel %vm124_vm8, %v599_v33, %v121_v39  ;;  %v243_v33 = vld [vmem:[%s976_s5 + $0x10] sm:$0xff]  ;;  %v242_v39 = vld [vmem:[%s976_s5 + $0x8] sm:$0xff] }
 0x281   :  { %v130_v42 = vsel %vm127_vm9, %v129_v40, %v125_v41  ;;  %v241_v40 = vld [vmem:[%s976_s5] sm:$0xff] }
 0x282   :  { %v131_v43 = vmul.f32 %v130_v42, %v112_v26  ;;  %v277_v26 = vld [vmem:[%s977_s6 + $0x20] sm:$0x1] }
 0x283   :  { %550 = vmatpush.msk.msra.mxu3 %vm73_vm0, %v277_v26 }
 0x284   :  { %151 = vperm.xlu1 %587, %v131_v43   ;;  %135 = vperm.xlu2 %585, %v131_v43  }
 0x285   :  { %296 = vmatpush.msra.mxu3 %v276_v27 }
 0x287   :  { %297 = vmatpush.msra.mxu3 %v275_v28 }
 0x289   :  { %298 = vmatpush.msra.mxu3 %v274_v31 }
 0x28b   :  { %299 = vmatpush.msra.mxu3 %v273_v34 }
 0x28c   :  { %592 = vset.pattern.permute.xlu1 %v695_v30  ;;  %586 = vset.pattern.permute.xlu2 %v696_v44  ;;  %v244_v30 = vld [vmem:[%s976_s5 + $0x18] sm:$0xff] }
 0x28d   :  { %191 = vperm.xlu1 %592, %v131_v43   ;;  %143 = vperm.xlu2 %586, %v131_v43  }
 0x28e   :  { %265 = vmatpush.msra.mxu2 %v244_v30  ;;  %551 = vmatmul.msk.f32.vlgmr.msra.gmra.mxu3 %vm246_vm10, %v240_v35 }
 0x290   :  { %266 = vmatpush.msra.mxu2 %v243_v33 }
 0x292   :  { %267 = vmatpush.msra.mxu2 %v242_v39 }
 0x294   :  { %268 = vmatpush.msra.mxu2 %v241_v40 }
 0x295   :  { %588 = vset.pattern.permute.xlu2 %v697_v45 }
 0x296   :  { %159 = vperm.xlu2 %588, %v131_v43  }
 0x29e   :  { %589 = vset.pattern.permute.xlu2 %v698_v46 }
 0x29f   :  { %167 = vperm.xlu2 %589, %v131_v43  }
 0x2a7   :  { %590 = vset.pattern.permute.xlu2 %v699_v47 }
 0x2a8   :  { %175 = vperm.xlu2 %590, %v131_v43  }
 0x2b0   :  { %591 = vset.pattern.permute.xlu2 %v700_v48 }
 0x2b1   :  { %183 = vperm.xlu2 %591, %v131_v43  }
 0x2de   :  { %v136_v49 = vpop.permute.xlu2 %135 }
 0x2df   :  { %v138_v1 = vmul.f32 %v136_v49, %v132_v60 }
 0x2e7   :  { %v144_v50 = vpop.permute.xlu2 %143 }
 0x2e8   :  { %v146_v63 = vmul.f32 %v539_v57, %v144_v50 }
 0x2ea   :  { %v147_v4 = vadd.f32 %v146_v63, %v138_v1  ;;  %v562_v63 = vld [vmem:[%s977_s6 + $0x38] sm:$0xff] }
 0x2f0   :  { %v160_v51 = vpop.permute.xlu2 %159 }
 0x2f1   :  { %v162_v9 = vmul.f32 %v541_v5, %v160_v51  ;;  %v353_v5 = vld [vmem:[#allocation2 + $0x2] sm:$0x3] }
 0x2f6   :  { %v152_v62 = vpop.permute.xlu1 %151 }
 0x2f7   :  { %v154_v2 = vmul.f32 %v540_v61, %v152_v62  ;;  %v564_v61 = vld [vmem:[%s977_s6 + $0x48] sm:$0x1]  ;;  %v563_v62 = vld [vmem:[%s977_s6 + $0x40] sm:$0xff] }
 0x2f8   :  { %565 = vmatpush.msk.msrb.mxu3 %vm73_vm0, %v564_v61 }
 0x2f9   :  { %v168_v58 = vpop.permute.xlu2 %167  ;;  %v155_v6 = vadd.f32 %v154_v2, %v147_v4  ;;  %v560_v4 = vld [vmem:[%s977_s6 + $0x28] sm:$0xff] }
 0x2fa   :  { %v170_v13 = vmul.f32 %v542_v8, %v168_v58  ;;  %412 = vmatpush.msrb.mxu3 %v563_v62  ;;  %v556_v8 = vld [vmem:[%s976_s5 + $0x40] sm:$0xff] }
 0x2fb   :  { %v163_v12 = vadd.f32 %v162_v9, %v155_v6  ;;  %v355_v6 = vsel %vm56_vm1, %v353_v5, 1.0  ;;  %v555_v9 = vld [vmem:[%s976_s5 + $0x38] sm:$0xff] }
 0x2fc   :  { %413 = vmatpush.msrb.mxu3 %v562_v63 }
 0x2fd   :  { %v171_v16 = vadd.f32 %v170_v13, %v163_v12 }
 0x2fe   :  { %414 = vmatpush.msrb.mxu3 %v561_v3 }
 0x2ff   :  { %v192_v18 = vpop.permute.xlu1 %191 }
 0x300   :  { %v194_v22 = vmul.f32 %v545_v17, %v192_v18  ;;  %415 = vmatpush.msrb.mxu3 %v560_v4  ;;  %v553_v18 = vld [vmem:[%s976_s5 + $0x28] sm:$0xff] }
 0x301   :  { %566 = vmatmul.msk.f32.vlgmr.msrb.gmra.mxu3 %vm246_vm10, %v355_v6 }
 0x302   :  { %v176_v7 = vpop.permute.xlu2 %175 }
 0x303   :  { %v178_v14 = vmul.f32 %v543_v11, %v176_v7  ;;  %v557_v7 = vld [vmem:[%s976_s5 + $0x48] sm:$0x1]  ;;  %v554_v11 = vld [vmem:[%s976_s5 + $0x30] sm:$0xff] }
 0x304   :  { %558 = vmatpush.msk.msrb.mxu2 %vm73_vm0, %v557_v7 }
 0x305   :  { %v179_v20 = vadd.f32 %v178_v14, %v171_v16 }
 0x306   :  { %380 = vmatpush.msrb.mxu2 %v556_v8 }
 0x308   :  { %381 = vmatpush.msrb.mxu2 %v555_v9 }
 0x30a   :  { %382 = vmatpush.msrb.mxu2 %v554_v11 }
 0x30b   :  { %v184_v19 = vpop.permute.xlu2 %183 }
 0x30c   :  { %v186_v21 = vmul.f32 %v544_v15, %v184_v19  ;;  %383 = vmatpush.msrb.mxu2 %v553_v18 }
 0x30e   :  { %v187_v23 = vadd.f32 %v186_v21, %v179_v20 }
 0x310   :  { %v195_v24 = vadd.f32 %v194_v22, %v187_v23 }
 0x311   :  { %v301_v41 = vpop.f32.mrf.mxu3 }
 0x312   :  { %197 = vrot.lane.b32.xlu2 %v195_v24, %s691_s14  ;;  %325 = vrot.lane.b32.xlu1 %v301_v41, %s701_s21 }
 0x31a   :  { %342 = vrot.lane.b32.xlu1 %v238_v32, %s691_s14 }
 0x36c   :  { %v198_v36 = vpop.permute.xlu2 %197 }
 0x36d   :  { %v200_v37 = vsel %vm56_vm1, %v793_v10, %v198_v36 }
 0x36e   :  { %v201_v38 = vsel %vm58_vm2, %v200_v37, 1.0 }
 0x36f   :  { %547 = vmatmul.msk.f32.vlgmr.msra.gmra.mxu1 %vm69_vm3, %v201_v38 }
 0x384   :  { %v326_v58 = vpop.permute.xlu1 %325  ;;  %v417_v21 = vpop.f32.mrf.mxu3 }
 0x385   :  { %441 = vrot.lane.b32.xlu1 %v417_v21, %s701_s21 }
 0x38c   :  { %v343_v12 = vpop.permute.xlu1 %342 }
 0x38d   :  { %458 = vrot.lane.b32.xlu1 %v353_v5, %s691_s14 }
 0x3ec   :  { %v234_v10 = vpop.f32.mrf.mxu1 }
 0x3ed   :  { %v237_v42 = vmax.f32 %v234_v10, 0.0  ;;  %v474_v10 = vld [vmem:[%s978_s7 + $0x20] sm:$0x1] }
 0x3ee   :  { %568 = vmatpush.msk.msrb.mxu0 %vm73_vm0, %v474_v10 }
 0x3ef   :  { %v239_v43 = vsel %vm56_vm1, %v237_v42, 1.0  ;;  %v473_v42 = vld [vmem:[%s978_s7 + $0x18] sm:$0xff] }
 0x3f0   :  { %549 = vmatmul.msk.f32.vlgmr.msra.gmra.mxu2 %vm246_vm10, %v239_v43  ;;  %v472_v43 = vld [vmem:[%s978_s7 + $0x10] sm:$0xff]  ;;  %493 = vmatpush.msrb.mxu0 %v473_v42 }
 0x3f2   :  { %494 = vmatpush.msrb.mxu0 %v472_v43 }
 0x3f7   :  { %v442_v36 = vpop.permute.xlu1 %441 }
 0x473   :  { %v270_v44 = vpop.f32.mrf.mxu2 }
 0x474   :  { %v304_v45 = vadd.f32 %v301_v41, %v270_v44 }
 0x476   :  { %v552_v46 = vmul.f32 -1.442695, %v304_v45  ;;  %v459_v45 = vpop.permute.xlu1 %458 }
 0x478   :  { %600 = vpow2.f32 %v552_v46 }
 0x47e   :  { %v601_v47 = vpop.eup %600 }
 0x47f   :  { %v308_v48 = vadd.f32 1.0, %v601_v47 }
 0x481   :  { %602 = vrcp.f32 %v308_v48  ;;  %v320_v52 = vand.u32 2147483648, %v308_v48  ;;  %v318_v54 = vand.u32 2147483647, %v308_v48  ;;  %vm314_vm12 = vweird.f32 %v308_v48 }
 0x483   :  { %v321_v56 = vor.u32 1.1754944e-38, %v320_v52  ;;  %vm319_vm14 = vcmp.eq.f32.partialorder %v318_v54, 8.507059e+37 }
 0x487   :  { %v603_v49 = vpop.eup %602 }
 0x488   :  { %v310_v50 = vmul.f32 %v603_v49, %v308_v48  ;;  %vm315_vm11 = vweird.f32 %v603_v49 }
 0x489   :  { %vm316_vm13 = vmor %vm314_vm12, %vm315_vm11 }
 0x48a   :  { %v311_v51 = vsub.f32 1.0, %v310_v50 }
 0x48c   :  { %v312_v53 = vmul.f32 %v603_v49, %v311_v51  ;;  %v470_v51 = vld [vmem:[%s978_s7] sm:$0xff] }
 0x48e   :  { %v313_v55 = vadd.f32 %v603_v49, %v312_v53 }
 0x490   :  { %v317_v57 = vsel %vm316_vm13, %v603_v49, %v313_v55 }
 0x491   :  { %v322_v59 = vsel %vm319_vm14, %v321_v56, %v317_v57 }
 0x492   :  { %v328_v60 = vmul.f32 %v326_v58, %v322_v59  ;;  %v335_v13 = vsub.f32 1.0, %v322_v59  ;;  %v345_v15 = vmul.f32 %v343_v12, %v322_v59 }
 0x494   :  { %330 = vrot.lane.b32.xlu0 %v328_v60, %s701_s21 }
 0x506   :  { %v331_v0 = vpop.permute.xlu0 %330 }
 0x507   :  { %v333_v1 = vadd.f32 %v331_v0, %v270_v44  ;;  %v471_v44 = vld [vmem:[%s978_s7 + $0x8] sm:$0xff]  ;;  %s704_s7 = smov [#allocation5]  }
 0x508   :  { %495 = vmatpush.msrb.mxu0 %v471_v44 }
 0x509   :  { %604 = vtanh.f32 %v333_v1 }
 0x50a   :  { %496 = vmatpush.msrb.mxu0 %v470_v51 }
 0x50f   :  { %v605_v2 = vpop.eup %604 }
 0x510   :  { %337 = vrot.lane.b32.xlu2 %v605_v2, %s702_s2 }
 0x56a   :  { %v338_v14 = vpop.permute.xlu2 %337 }
 0x56b   :  { %v340_v16 = vmul.f32 %v338_v14, %v335_v13 }
 0x56d   :  { %v346_v17 = vadd.f32 %v345_v15, %v340_v16 }
 0x56f   :  { %348 = vrot.lane.b32.xlu2 %v346_v17, %s702_s2 }
 0x5c9   :  { %v349_v19 = vpop.permute.xlu2 %348 }
 0x5ca   :  { %352 = vst.msk [vmem:[#allocation6] sm:$0x3] %vm351_vm15, %v349_v19  ;;  %v354_v20 = vsel %vm56_vm1, %v349_v19, 1.0 }
 0x5cb   :  { %559 = vmatmul.msk.f32.vlgmr.msrb.gmra.mxu2 %vm246_vm10, %v354_v20 }
 0x64e   :  { %v385_v22 = vpop.f32.mrf.mxu2 }
 0x64f   :  { %v420_v23 = vadd.f32 %v417_v21, %v385_v22 }
 0x651   :  { %v567_v24 = vmul.f32 -1.442695, %v420_v23 }
 0x653   :  { %606 = vpow2.f32 %v567_v24 }
 0x659   :  { %v607_v25 = vpop.eup %606 }
 0x65a   :  { %v424_v26 = vadd.f32 1.0, %v607_v25 }
 0x65c   :  { %608 = vrcp.f32 %v424_v26  ;;  %v436_v30 = vand.u32 2147483648, %v424_v26  ;;  %v434_v32 = vand.u32 2147483647, %v424_v26  ;;  %vm430_vm3 = vweird.f32 %v424_v26 }
 0x65e   :  { %v437_v34 = vor.u32 1.1754944e-38, %v436_v30  ;;  %vm435_vm5 = vcmp.eq.f32.partialorder %v434_v32, 8.507059e+37 }
 0x662   :  { %v609_v27 = vpop.eup %608 }
 0x663   :  { %v426_v28 = vmul.f32 %v609_v27, %v424_v26  ;;  %vm431_vm2 = vweird.f32 %v609_v27 }
 0x664   :  { %vm432_vm4 = vmor %vm430_vm3, %vm431_vm2 }
 0x665   :  { %v427_v29 = vsub.f32 1.0, %v426_v28 }
 0x667   :  { %v428_v31 = vmul.f32 %v609_v27, %v427_v29 }
 0x669   :  { %v429_v33 = vadd.f32 %v609_v27, %v428_v31 }
 0x66b   :  { %v433_v35 = vsel %vm432_vm4, %v609_v27, %v429_v33 }
 0x66c   :  { %v438_v37 = vsel %vm435_vm5, %v437_v34, %v433_v35 }
 0x66d   :  { %v444_v38 = vmul.f32 %v442_v36, %v438_v37  ;;  %v451_v46 = vsub.f32 1.0, %v438_v37  ;;  %v461_v48 = vmul.f32 %v459_v45, %v438_v37 }
 0x66f   :  { %446 = vrot.lane.b32.xlu0 %v444_v38, %s701_s21 }
 0x6e1   :  { %v447_v39 = vpop.permute.xlu0 %446 }
 0x6e2   :  { %v449_v40 = vadd.f32 %v447_v39, %v385_v22 }
 0x6e4   :  { %610 = vtanh.f32 %v449_v40 }
 0x6ea   :  { %v611_v41 = vpop.eup %610 }
 0x6eb   :  { %453 = vrot.lane.b32.xlu2 %v611_v41, %s702_s2 }
 0x745   :  { %v454_v47 = vpop.permute.xlu2 %453 }
 0x746   :  { %v456_v49 = vmul.f32 %v454_v47, %v451_v46 }
 0x748   :  { %v462_v50 = vadd.f32 %v461_v48, %v456_v49 }
 0x74a   :  { %464 = vrot.lane.b32.xlu0 %v462_v50, %s702_s2  ;;  %s507_s2 = sshll.u32 %s704_s7, 4  ;;  %s508_s2 = int_to_ptr.vmem [resolvable:$true] %s507_s2 }
 0x7bc   :  { %v465_v52 = vpop.permute.xlu0 %464 }
 0x7bd   :  { %468 = vst.msk [vmem:[#allocation6 + $0x2] sm:$0x3] %vm351_vm15, %v465_v52  ;;  %v469_v53 = vsel %vm56_vm1, %v465_v52, 1.0 }
 0x7be   :  { %569 = vmatmul.msk.f32.vlgmr.msrb.gmra.mxu0 %vm246_vm10, %v469_v53  ;;  %525 = dma.vmem_to_hbm [thread:$0]  %s518_s28, 64, %s520_s10, [#allocation7], %s691_s14, %s691_s14, %s692_s15  }
 0x83b   :  { %v498_v54 = vpop.f32.mrf.mxu0 }
 0x83c   :  { %501 = vst.msk [vmem:[#allocation5] sm:$0x3] %vm351_vm15, %v498_v54 }
 0x83d   :  { %512 = dma.vmem_to_hbm [thread:$0]  %s508_s2, 32, %s510_s12, [#allocation4]  }
 0x83e   :  { %686 = dma.done.wait [#allocation4], 32  }
 0x83f   :  { %687 = vsyncadd [#allocation4], 4294967264 }
 0x840   :  { %688 = dma.done.wait [#allocation7], 64  }
 0x841   :  { %689 = vsyncadd [#allocation7], 4294967232 }
 0x842   :  { %534 = vsyncpa [#allocation3], 1 }
 0x843   :  { %535 = vsyncpa [#allocation4], 1 }
 0x844   :  { %536 = vsyncpa [#allocation7], 1 }

</bundles_post_ra>
